<compile_context>
chip_gen: v7x
topology: tpu7x:2x2x1
jax: 0.10.0
libtpu: 0.0.40
codegen_flags: <defaults>
</compile_context>

<pallas_src>
import jax
import jax.numpy as jnp
from jax.experimental import pallas as pl
from jax.experimental.pallas import tpu as pltpu


# ---------------------------------------------------------------------------
# Channel permutation map (used by the general fallback path).
# ---------------------------------------------------------------------------
def _shuffle_channel_map(num_channels: int, groups: int):
    """For each output channel, the source channel in the original input x.

    PyTorch forward:
      y = cat([x[:, C//2:], x[:, :C//2]], dim=1)        # half swap
      z = y.view(N, g, C/g, H, W).permute(0,2,1,3,4)    # channel shuffle
      out channel (ci*g + gi)  <-  y channel (gi*cpg + ci)
                               <-  x channel (gi*cpg + ci + C//2) mod C
    """
    cpg = num_channels // groups
    src = []
    for c_out in range(num_channels):
        ci = c_out // groups
        gi = c_out % groups
        src.append((gi * cpg + ci + num_channels // 2) % num_channels)
    return tuple(src)


# ---------------------------------------------------------------------------
# Fast path: permutation folded into the BlockSpec DMA; body is a pure copy.
# ---------------------------------------------------------------------------
def _copy_kernel(x_ref, o_ref):
    # x_ref / o_ref: (cpg, hw_tile) lane-dense VMEM tiles.
    o_ref[...] = x_ref[...]


def _pick_hw_tile(hw, cpg, dtype_bytes, budget_bytes=2 * 1024 * 1024):
    """Largest multiple-of-128 divisor of hw whose (cpg, tile) block fits budget.

    Keeps 2x(in+out) double-buffered blocks <= ~8 MiB, safe for v5e's 16 MiB
    default scoped VMEM and far under v7x's 64 MiB physical VMEM.
    """
    if cpg * hw * dtype_bytes <= budget_bytes:
        return hw
    divisors = [d for d in range(128, hw, 128) if hw % d == 0]
    under = [d for d in divisors if cpg * d * dtype_bytes <= budget_bytes]
    if under:
        return max(under)
    return min(divisors) if divisors else hw


def _shuffle_block_dma(x: jax.Array, groups: int) -> jax.Array:
    """Requires groups even and (H*W) % 128 == 0 (covers standard ShuffleNet)."""
    N, C, H, W = x.shape
    g = groups
    cpg = C // g
    HW = H * W
    dtype_bytes = jnp.dtype(x.dtype).itemsize

    hw_tile = _pick_hw_tile(HW, cpg, dtype_bytes)
    n_hw = HW // hw_tile
    g_half = g // 2

    # Free, contiguous reshape: (N, C, H, W) -> (N, g, cpg, HW).
    x4 = x.reshape(N, g, cpg, HW)

    # out3[n, ci, gi*HW + hw] = x4[n, (gi + g//2) % g, ci, hw]
    def in_map(n, gi, h):
        return (n, (gi + g_half) % g, 0, h)

    def out_map(n, gi, h):
        return (n, 0, gi * n_hw + h)

    out3 = pl.pallas_call(
        _copy_kernel,
        out_shape=jax.ShapeDtypeStruct((N, cpg, g * HW), x.dtype),
        grid_spec=pltpu.PrefetchScalarGridSpec(
            num_scalar_prefetch=0,
            grid=(N, g, n_hw),
            in_specs=[pl.BlockSpec((None, None, cpg, hw_tile), in_map)],
            out_specs=pl.BlockSpec((None, cpg, hw_tile), out_map),
        ),
        compiler_params=pltpu.CompilerParams(
            dimension_semantics=("parallel", "parallel", "parallel")
        ),
    )(x4)

    # (N, cpg, g, HW) row-major == shuffled channel order -> free reshape back.
    return out3.reshape(N, C, H, W)


# ---------------------------------------------------------------------------
# General fallback: in-kernel permute on lane-dense (C, HW) tiles.
# ---------------------------------------------------------------------------
def _make_permute_kernel(src_channels):
    def kernel(x_ref, o_ref):
        # x_ref / o_ref: (C, HW). Static per-channel row copies, full lane width.
        for c_out, c_src in enumerate(src_channels):
            o_ref[pl.ds(c_out, 1), :] = x_ref[pl.ds(c_src, 1), :]
    return kernel


def _shuffle_block_general(x: jax.Array, groups: int) -> jax.Array:
    N, C, H, W = x.shape
    HW = H * W
    x3 = x.reshape(N, C, HW)
    kernel = _make_permute_kernel(_shuffle_channel_map(C, groups))

    out3 = pl.pallas_call(
        kernel,
        out_shape=jax.ShapeDtypeStruct((N, C, HW), x.dtype),
        grid_spec=pltpu.PrefetchScalarGridSpec(
            num_scalar_prefetch=0,
            grid=(N,),
            in_specs=[pl.BlockSpec((None, C, HW), lambda n: (n, 0, 0))],
            out_specs=pl.BlockSpec((None, C, HW), lambda n: (n, 0, 0)),
        ),
        compiler_params=pltpu.CompilerParams(
            dimension_semantics=("parallel",)
        ),
    )(x3)
    return out3.reshape(N, C, H, W)


# ---------------------------------------------------------------------------
# Public entry point (matches ShuffleBlock.forward).
# ---------------------------------------------------------------------------
def shuffle_block(x: jax.Array, groups: int) -> jax.Array:
    """Pallas implementation of ShuffleBlock.forward. x: [N, C, H, W]."""
    N, C, H, W = x.shape
    assert C % groups == 0, "channels must be divisible by groups"
    if groups % 2 == 0 and (H * W) % 128 == 0:
        # DMA-gather fast path (covers standard ShuffleNet-style configs).
        return _shuffle_block_dma(x, groups)
    # General path (odd groups / non-128-multiple spatial size, odd C, ...).
    return _shuffle_block_general(x, groups)


def shuffle_block_ref(x: jax.Array, groups: int) -> jax.Array:
    """Pure-JAX reference matching the PyTorch module exactly."""
    N, C, H, W = x.shape
    cpg = C // groups
    x = jnp.concatenate([x[:, C // 2:], x[:, : C // 2]], axis=1)
    x = x.reshape(N, groups, cpg, H, W)
    x = jnp.transpose(x, (0, 2, 1, 3, 4))
    return x.reshape(N, C, H, W)


if __name__ == "__main__":
    key = jax.random.PRNGKey(0)
    N, C, H, W = 2, 4, 16, 16
    groups = 2

    x = jax.random.normal(key, (N, C, H, W), dtype=jnp.float32)

    # Fast (DMA-gather) path at the demo shape.
    out = shuffle_block(x, groups)
    out = jax.block_until_ready(out)

    ref = shuffle_block_ref(x, groups)
    assert out.shape == ref.shape
    assert out.dtype == ref.dtype
    assert bool(jnp.array_equal(out, ref)), "Pallas output mismatch vs reference"

    # Also exercise the general fallback path (odd groups) for coverage.
    x2 = jax.random.normal(key, (N, 6, H, 12), dtype=jnp.float32)
    out2 = jax.block_until_ready(shuffle_block(x2, 3))
    assert bool(jnp.array_equal(out2, shuffle_block_ref(x2, 3))), \
        "Pallas fallback mismatch vs reference"

    print("KERNEL_OK")
</pallas_src>

<mosaic_0001>
module attributes {stable_mosaic.version = 11 : i64} {
  func.func @_copy_kernel(%arg0: i32, %arg1: i32, %arg2: i32, %arg3: memref<1x1x2x256xf32, #tpu.memory_space<vmem>>, %arg4: memref<1x2x256xf32, #tpu.memory_space<vmem>>) attributes {dimension_semantics = [#tpu.dimension_semantics<parallel>, #tpu.dimension_semantics<parallel>, #tpu.dimension_semantics<parallel>], iteration_bounds = array<i64: 2, 2, 1>, scalar_prefetch = 0 : i64, scratch_operands = 0 : i64, tpu.core_type = #tpu.core_type<tc>, window_params = [{transform_indices = @transform_0, window_bounds = array<i64: 1, 1, 2, 256>}, {transform_indices = @transform_1, window_bounds = array<i64: 1, 2, 256>}]} {
    %c0 = arith.constant 0 : index
    %c0_0 = arith.constant 0 : index
    %c0_1 = arith.constant 0 : index
    %c0_2 = arith.constant 0 : index
    %0 = vector.load %arg3[%c0, %c0_0, %c0_1, %c0_2] : memref<1x1x2x256xf32, #tpu.memory_space<vmem>>, vector<1x1x2x256xf32>
    %1 = vector.shape_cast %0 : vector<1x1x2x256xf32> to vector<2x256xf32>
    %c0_3 = arith.constant 0 : index
    %c0_4 = arith.constant 0 : index
    %c0_5 = arith.constant 0 : index
    %2 = vector.load %arg4[%c0_3, %c0_4, %c0_5] : memref<1x2x256xf32, #tpu.memory_space<vmem>>, vector<1x2x256xf32>
    %3 = vector.shape_cast %2 : vector<1x2x256xf32> to vector<2x256xf32>
    %4 = vector.shape_cast %1 : vector<2x256xf32> to vector<1x2x256xf32>
    tpu.vector_store %arg4[%c0_3, %c0_4, %c0_5], %4 {strides = array<i32>} : memref<1x2x256xf32, #tpu.memory_space<vmem>>, vector<1x2x256xf32>,
    return
  }
  func.func @transform_0(%arg0: i32, %arg1: i32, %arg2: i32) -> (i32, i32, i32, i32) {
    %c1_i32 = arith.constant 1 : i32
    %0 = arith.addi %arg1, %c1_i32 : i32
    %c2_i32 = arith.constant 2 : i32
    %c0_i32 = arith.constant 0 : i32
    %1 = arith.cmpi eq, %c2_i32, %c0_i32 : i32
    %c1_i32_0 = arith.constant 1 : i32
    %2 = arith.select %1, %c1_i32_0, %c2_i32 : i32
    %3 = arith.remsi %0, %2 : i32
    %c0_i32_1 = arith.constant 0 : i32
    %4 = arith.cmpi ne, %3, %c0_i32_1 : i32
    %c0_i32_2 = arith.constant 0 : i32
    %5 = arith.cmpi slt, %3, %c0_i32_2 : i32
    %c0_i32_3 = arith.constant 0 : i32
    %6 = arith.cmpi slt, %2, %c0_i32_3 : i32
    %7 = arith.xori %5, %6 : i1
    %8 = arith.andi %7, %4 : i1
    %9 = arith.addi %3, %2 : i32
    %10 = arith.select %8, %9, %3 : i32
    %c0_i32_4 = arith.constant 0 : i32
    %c0_i32_5 = arith.constant 0 : i32
    return %arg0, %10, %c0_i32_4, %arg2 : i32, i32, i32, i32
  }
  func.func @transform_1(%arg0: i32, %arg1: i32, %arg2: i32) -> (i32, i32, i32) {
    %c1_i32 = arith.constant 1 : i32
    %0 = arith.muli %arg1, %c1_i32 : i32
    %1 = arith.addi %0, %arg2 : i32
    %c0_i32 = arith.constant 0 : i32
    %c0_i32_0 = arith.constant 0 : i32
    return %arg0, %c0_i32, %1 : i32, i32, i32
  }
}

</mosaic_0001>

<bundles_post_ra>
// kernel: tpu_custom_call.1
= control target key start
LH: loop header
LB: loop body
LE: loop exit
PB: predicated region body
PF: predicated region fallthrough
CT: control target
= control target key end

     0   :  { %6 = vsyncpa [#allocation3], 0  ;;  %s860_s0 = inlined_call_operand.hbm [shape: f32[2,2,2,256], index: 0, kind: input, shape index: {}]   ;;  %s861_s1 = inlined_call_operand.hbm [shape: f32[2,2,512], index: 1, kind: output, shape index: {}]  }
   0x1   :  { %8 = vsyncpa [#allocation3 + $0x1], 0 }
   0x2   :  { %9 = vsyncpa [#allocation4], 0 }
   0x3   :  { %11 = vsyncpa [#allocation4 + $0x1], 0  ;;  %s626_s6 = smov 0   ;;  %s628_s7 = smov 0  }
   0x4   :  { %s630_s8 = smov 0   ;;  %s632_s9 = smov 0  }
   0x5   :  { %s634_s10 = smov 0   ;;  %s636_s11 = smov 0  }
   0x6   :  { %s638_s12 = smov 0   ;;  %s640_s13 = smov 0  }
   0x7   :  { %s642_s14 = smov 0   ;;  %s644_s15 = smov 0  }
   0x8   :  { %s646_s16 = smov 0  }
   0x9 LB: > { %s332_s17 = sadd.s32 4294967295, %s612_s16   ;;  %s333_s18 = sadd.s32 4294967294, %s612_s16   ;;  %s612_s16 = sphi %s646_s16, %s17_s16   ;;  %s608_s15 = sphi %s644_s15, %s887_s15   ;;  %s604_s14 = sphi %s642_s14, %s886_s14   ;;  %s600_s13 = sphi %s640_s13, %s885_s13   ;;  %s596_s12 = sphi %s638_s12, %s884_s12   ;;  %s592_s11 = sphi %s636_s11, %s883_s11   ;;  %s588_s10 = sphi %s634_s10, %s882_s10   ;;  %s584_s9 = sphi %s632_s9, %s881_s9   ;;  %s580_s8 = sphi %s630_s8, %s880_s8   ;;  %s576_s7 = sphi %s628_s7, %s879_s7   ;;  %s572_s6 = sphi %s626_s6, %s878_s6  }
   0xa   : > { %s32_s19 = sadd.s32 1, %s604_s14  ;;  %s36_s20 = sadd.s32 1, %s608_s15 }
   0xb   : > { %p34_p0 = scmp.ge.s32.totalorder %s32_s19, 2  ;;  %s42_s21 = ssub.s32 0, %s32_s19 }
   0xc   : > { %s73_s22 = sadd.s32 1, %s592_s11  ;;  %s334_s24 = smin.u32 %s42_s21, %s32_s19 }
   0xd   : > { %s686_s23 = scalar_select %p34_p0, 0, %s32_s19  }
   0xe   : > { %s889_s20 = smov (!%p34_p0, %s36_s20), %s608_s15  ;;  %s44_s26 = sand.u32 1, %s334_s24  }
   0xf   : > { %865 = sst [smem:[#allocation8_spill]] %s686_s23  ;;  %s53_s25 = sadd.s32 1, %s686_s23 }
  0x10   : > { %p38_p1 = scmp.ge.s32.totalorder %s889_s20, 2  ;;  %s55_s27 = ssub.s32 0, %s53_s25 }
  0x11   : > { %p336_p2 = scmp.lt.s32.totalorder %s44_s26, 0  ;;  %s51_s29 = sadd.s32 2, %s44_s26 }
  0x12   : > { %s891_s20 = smov (%p38_p1, %s889_s20), 0  ;;  %s337_s30 = smin.u32 %s55_s27, %s53_s25 }
  0x13   : > { %866 = sst [smem:[#allocation9_spill]] %s891_s20  ;;  %s66_s28 = ssub.s32 %s608_s15, %s891_s20 }
  0x14   : > { %p80_p3 = scmp.ne.s32.totalorder %s592_s11, %s588_s10  ;;  %s893_s29 = smov (!%p336_p2, %s51_s29), %s44_s26 }
  0x15   : > { %s57_s2 = sand.u32 1, %s337_s30   ;;  %p81_p4 = scmp.eq.s32.totalorder %s612_s16, 0 }
  0x16   : > { %p86_p5 = scmp.ne.s32.totalorder %s588_s10, %s584_s9  ;;  %p87_p7 = scmp.eq.s32.totalorder %s332_s17, 0 }
  0x17   : > { %p701_p6 = por %p81_p4, %p80_p3  ;;  %p339_p8 = scmp.lt.s32.totalorder %s57_s2, 0 }
  0x18   : > { %s64_s4 = sadd.s32 2, %s57_s2  ;;  %p707_p9 = por %p87_p7, %p86_p5 }
  0x19   : > { %s99_s9 = ssub.s32 %s604_s14, %s686_s23  ;;  %s895_s4 = smov (!%p339_p8, %s64_s4), %s57_s2 }
  0x1a   : > { %s100_s19 = sor.u32 %s99_s9, %s66_s28  ;;  %s103_s21 = sadd.s32 1, %s580_s8 }
  0x1b   : > { %s67_s24 = ssub.s32 %s893_s29, %s895_s4  ;;  %p101_p10 = scmp.eq.s32.totalorder %s100_s19, 0 }
  0x1c   : > { %s68_s25 = sor.u32 %s67_s24, %s66_s28  ;;  %p113_p11 = scmp.ne.s32.totalorder %s580_s8, %s576_s7 }
  0x1d   : > { %p71_p12 = scmp.eq.s32.totalorder %s68_s25, 0  ;;  %p114_p13 = scmp.eq.s32.totalorder %s332_s17, 3 }
  0x1e   : > { %s720_s26 = scalar_select %p101_p10, %s580_s8, %s103_s21  }
  0x1f   : > { %s725_s27 = scalar_select %p71_p12, %s592_s11, %s73_s22  }
  0x20   : > { %p727_p0 = por %p114_p13, %p113_p11  ;;  %p119_p1 = scmp.ne.s32.totalorder %s576_s7, %s572_s6 }
  0x21   : > { %p120_p2 = scmp.eq.s32.totalorder %s333_s18, 3  ;;  %p370_p3 = scmp.lt.s32.totalorder %s612_s16, 4 }
  0x22   : > { %s869_s30 = scalar_select %p727_p0, 1, 0 }
  0x23   : > { %s140_s28 = sand.u32 1, %s592_s11   ;;  %p737_p4 = por %p120_p2, %p119_p1 }
  0x24   : > { %s342_s17 = sshll.u32 %s140_s28, 2  ;;  %s346_s4 = sshll.u32 %s893_s29, 1 }
  0x25   : > { %s870_s2 = scalar_select %p737_p4, 1, 0 }
  0x26   : > { %s347_s22 = sshll.u32 %s608_s15, 2  ;;  %s144_s19 = scalar_lea.vmem [#allocation2], %s342_s17 }
  0x27   : > { %s165_s9 = sadd.s32 %s347_s22, %s346_s4  ;;  %s169_s21 = sshll.u32 %s144_s19, 4  ;;  %s743_s21 = int_to_ptr.vmem [resolvable:$true] %s169_s21 }
  0x28   : > { %s348_s24 = sshll.u32 %s165_s9, 5  ;;  %p752_p5 = pnand %p370_p3, %p701_p6 }
  0x29   : > { %s748_s23 = scalar_lea.hbm %s860_s0, %s348_s24  ;;  %s141_s29 = scalar_lea.sflag [#allocation3], %s140_s28 }
  0x2a   : > { %s460_s17 = scalar_lea.hbm %s748_s23, 64  ;;  %p462_p11 = pneg %p752_p5 }
  0x2b   : > { %p461_p10 = scmp.ne.s32.totalorder %s748_s23, %s460_s17  ;;  %s465_s4 = scalar_lea.hbm %s860_s0, 256 }
  0x2c   : > { %p466_p6 = scmp.lt.u32.totalorder %s748_s23, %s860_s0  ;;  %p467_p1 = scmp.lt.u32.totalorder %s465_s4, %s460_s17 }
  0x2d   : > { %p463_p12 = pnand %p462_p11, %p461_p10  ;;  %p469_p3 = scmp.lt.u32.totalorder %s460_s17, %s748_s23 }
  0x2e   : > { %p468_p2 = por %p467_p1, %p466_p6 }
  0x2f   : > { %p464_p13 = pneg %p463_p12 }
  0x30   : > { %p470_p7 = por %p469_p3, %p468_p2 }
  0x32   : > { %p471_p8 = pnand %p470_p7, %p464_p13 }
  0x34   : > { %474 = shalt.err (!%p471_p8)
}
  0x35   : > { %s475_s28 = scalar_lea.vmem %s743_s21, 64  ;;  %s614_s19 = smov [#allocation2]  }
  0x36   : > { %p476_p10 = scmp.ne.s32.totalorder %s743_s21, %s475_s28  ;;  %s480_s24 = sshll.u32 %s614_s19, 4  ;;  %s481_s24 = int_to_ptr.vmem [resolvable:$false] %s480_s24 }
  0x37   : > { %s482_s25 = scalar_lea.vmem %s481_s24, 128  ;;  %p483_p0 = scmp.lt.s32.totalorder %s743_s21, %s481_s24 }
  0x38   : > { %p478_p12 = pnand %p476_p10, %p462_p11  ;;  %p484_p6 = scmp.lt.s32.totalorder %s482_s25, %s475_s28 }
  0x3a   : > { %p479_p4 = pneg %p478_p12  ;;  %p485_p1 = por %p484_p6, %p483_p0 }
  0x3c   : > { %p486_p2 = pnand %p485_p1, %p479_p4 }
  0x3e   : > { %489 = shalt.err (!%p486_p2)
}
  0x3f   : > { %365 = dma.hbm_to_vmem [thread:$0]  (!%p752_p5), %s748_s23, 64, %s743_s21, %s141_s29  }
  0x40   : > { %p872_p7 = scmp.lt.s32.totalorder %s612_s16, 5  ;;  %p873_p8 = scmp.ge.s32.totalorder %s612_s16, 1 }
  0x42   : > { %p175_p11 = pnand %p873_p8, %p872_p7 }
  0x43   : > { %s180_s17 = sand.u32 (!%p175_p11), 1, %s588_s10  }
  0x44   : > { %178 = sbr.rel (%p175_p11) target bundleno = 104 (0x68), region = 24  ;;  %s350_s20 = sshll.u32 (!%p175_p11), %s180_s17, 2 }
  0x45   : > { %s181_s3 = scalar_lea.sflag (!%p175_p11), [#allocation3], %s180_s17  ;;  %s184_s4 = scalar_lea.vmem (!%p175_p11), [#allocation2], %s350_s20 }
  0x4b   : > { %563 = dma.done.wait (%p707_p9), %s181_s3, 64  }
  0x4c   : > { %565 = vsyncadd (%p707_p9), %s181_s3, 4294967232  ;;  %s200_s23 = sand.u32 1, %s576_s7   ;;  %s353_s21 = sshll.u32 %s596_s12, 1  ;;  %v219_v0 = vld [vmem:[%s184_s4] sm:$0xf] }
  0x4d   : > { %s351_s18 = sshll.u32 %s200_s23, 2  ;;  %s354_s29 = sshll.u32 %s600_s13, 2 }
  0x4e   : > { %s202_s22 = scalar_lea.vmem [#allocation5], %s351_s18  ;;  %s235_s28 = sadd.s32 %s354_s29, %s353_s21 }
  0x4f   : > { %s239_s9 = sshll.u32 %s202_s22, 4  ;;  %s355_s19 = sshll.u32 %s235_s28, 5  ;;  %220 = vst [vmem:[%s202_s22] sm:$0xf] %v219_v0  ;;  %s795_s9 = int_to_ptr.vmem [resolvable:$true] %s239_s9 }
  0x50   : > { %s800_s5 = scalar_lea.hbm %s861_s1, %s355_s19  ;;  %s222_s17 = scalar_lea.sflag [#allocation4], %s200_s23 }
  0x51   : > { %s490_s12 = scalar_lea.vmem %s795_s9, 64  ;;  %p874_p0 = scmp.ne.s32.totalorder %s869_s30, 0 }
  0x52   : > { %p491_p9 = scmp.ne.s32.totalorder %s795_s9, %s490_s12  ;;  %s615_s13 = smov [#allocation5]  }
  0x53   : > { %s494_s20 = sshll.u32 %s615_s13, 4  ;;  %s495_s20 = int_to_ptr.vmem [resolvable:$false] %s494_s20 }
  0x54   : > { %p492_p4 = pnand %p491_p9, %p874_p0  ;;  %s496_s3 = scalar_lea.vmem %s495_s20, 128 }
  0x55   : > { %p497_p13 = scmp.lt.s32.totalorder %s795_s9, %s495_s20  ;;  %p498_p3 = scmp.lt.s32.totalorder %s496_s3, %s490_s12 }
  0x56   : > { %p493_p5 = pneg %p492_p4 }
  0x57   : > { %p499_p10 = por %p498_p3, %p497_p13 }
  0x59   : > { %p500_p12 = pnand %p499_p10, %p493_p5 }
  0x5b   : > { %503 = shalt.err (!%p500_p12)
}
  0x5c   : > { %s504_s4 = scalar_lea.hbm %s800_s5, 64  ;;  %s508_s18 = scalar_lea.hbm %s861_s1, 256 }
  0x5d   : > { %p505_p6 = scmp.ne.s32.totalorder %s800_s5, %s504_s4  ;;  %p509_p7 = scmp.lt.u32.totalorder %s800_s5, %s861_s1 }
  0x5e   : > { %p510_p8 = scmp.lt.u32.totalorder %s508_s18, %s504_s4  ;;  %p512_p9 = scmp.lt.u32.totalorder %s504_s4, %s800_s5 }
  0x5f   : > { %p506_p1 = pnand %p505_p6, %p874_p0 }
  0x60   : > { %p511_p11 = por %p510_p8, %p509_p7 }
  0x61   : > { %p507_p2 = pneg %p506_p1 }
  0x62   : > { %p513_p4 = por %p512_p9, %p511_p11 }
  0x64   : > { %p514_p5 = pnand %p513_p4, %p507_p2 }
  0x66   : > { %517 = shalt.err (!%p514_p5)
}
  0x67   : > { %360 = dma.vmem_to_hbm [thread:$0]  (%p874_p0), %s795_s9, 64, %s800_s5, %s222_s17  }
  0x68 PF: > { %p371_p13 = scmp.ge.s32.totalorder %s612_s16, 2  ;;  %s251_s28 = sand.u32 1, %s572_s6  }
  0x69   : > { %p875_p3 = scmp.ne.s32.totalorder %s870_s2, 0  ;;  %s252_s19 = scalar_lea.sflag [#allocation4], %s251_s28 }
  0x6b   : > { %p367_p10 = pnand %p371_p13, %p875_p3 }
  0x6d   : > { %567 = dma.done.wait (!%p367_p10), %s252_s19, 64  }
  0x6e   : > { %569 = vsyncadd (!%p367_p10), %s252_s19, 4294967232  ;;  %s17_s16 = sadd.s32 1, %s612_s16   ;;  %s876_s30 = sld [smem:[#allocation8_spill]] }
  0x6f   : > { %p14_p12 = scmp.ge.s32.totalorder %s17_s16, 6   ;;  %s877_s24 = sld [smem:[#allocation9_spill]] }
  0x70   : > { %s878_s6 = smov %s576_s7  ;;  %s879_s7 = smov %s580_s8 }
  0x71   : > { %s880_s8 = smov %s720_s26  ;;  %s881_s9 = smov %s588_s10 }
  0x72   : > { %s882_s10 = smov %s592_s11  ;;  %s883_s11 = smov %s725_s27 }
  0x73   : > { %s884_s12 = smov %s604_s14  ;;  %s885_s13 = smov %s608_s15 }
  0x74   : > { %s886_s14 = smov %s876_s30  ;;  %16 = sbr.rel (!%p14_p12) target bundleno = 9 (0x9), region = 69 }
  0x75   : > { %s887_s15 = smov %s877_s24 }
  0x7b   :  { %257 = vsyncpa [#allocation3], 1 }
  0x7c   :  { %259 = vsyncpa [#allocation3 + $0x1], 1 }
  0x7d   :  { %260 = vsyncpa [#allocation4], 1 }
  0x7e   :  { %262 = vsyncpa [#allocation4 + $0x1], 1 }

</bundles_post_ra>
